<compile_context>
chip_gen: v7x
topology: tpu7x:2x2x1
jax: 0.10.0
libtpu: 0.0.40
codegen_flags: <defaults>
</compile_context>

<pallas_src>
import jax
import jax.numpy as jnp
import numpy as np
from jax import lax
from jax.experimental import pallas as pl
from jax.experimental.pallas import tpu as pltpu


def graph_reasoning_kernel(x_ref, mask_ref, wqk_ref, bqk_ref, wg_ref, bg_ref,
                           o_ref):
    Bt, N, D = x_ref.shape
    R = Bt * N

    x = x_ref[...]                                        # (Bt, N, D) f32
    x2 = x.reshape(R, D)                                  # row slab
    x_bf = x2.astype(jnp.bfloat16)

    # Fused Q/K projection: one bf16 MXU matmul with 2*D output lanes.
    qk = jnp.dot(x_bf, wqk_ref[...],
                 preferred_element_type=jnp.float32) + bqk_ref[...]
    q = qk[:, :D].astype(jnp.bfloat16)                    # (R, D)
    k = qk[:, D:].astype(jnp.bfloat16)                    # (R, D)

    # Dense scores over the whole slab (contract last dims -> no k transpose),
    # plus the block-diagonal additive mask (0 in-block, -1e30 off-block).
    s = lax.dot_general(q, k, (((1,), (1,)), ((), ())),
                        preferred_element_type=jnp.float32)        # (R, R)
    s = s + mask_ref[...]

    # Lane-dense row softmax (numerator only; normalization is applied after
    # the aggregation, flash-attention style — mathematically identical).
    p = jnp.exp(s - jnp.max(s, axis=-1, keepdims=True))            # (R, R)
    denom = jnp.sum(p, axis=-1, keepdims=True)                     # (R, 1)

    # Dense aggregation: masked entries are exactly zero.
    sgr = jnp.dot(p.astype(jnp.bfloat16), x_bf,
                  preferred_element_type=jnp.float32)              # (R, D)
    sgr = sgr * pl.reciprocal(denom, approx=True)

    # Output projection + ReLU epilogue in f32.
    out = jnp.dot(sgr.astype(jnp.bfloat16), wg_ref[...],
                  preferred_element_type=jnp.float32) + bg_ref[...]
    o_ref[...] = jnp.maximum(out, 0.0).reshape(Bt, N, D).astype(o_ref.dtype)


def _pick_block_batches(B, N, *, min_rows=64, pref_rows=128, max_rows=256):
    """Pick the batch block.  Prefer >=2 grid steps (v7x has 2 TensorCores and
    "parallel" shards the grid across them) while keeping >= min_rows rows per
    step; cap rows at max_rows to bound the dense-score flop inflation and the
    VMEM footprint of the (R, R) intermediates."""
    divisors = [d for d in range(1, B + 1) if B % d == 0]
    multi = [d for d in divisors
             if B // d >= 2 and min_rows <= d * N <= max_rows]
    if multi:
        return max(multi)
    single = [d for d in divisors if pref_rows <= d * N <= max_rows]
    if single:
        return max(single)
    fit = [d for d in divisors if d * N <= max_rows]
    return max(fit) if fit else 1


def graph_reasoning(sim_emb, w_qk, b_qk, wg, bg, *, block_b=None):
    """sim_emb: (B, N, D) f32.
       w_qk: (D, 2D) bf16 fused [Wq | Wk], already transposed to (in, out).
       b_qk: (1, 2D) f32 fused [bq | bk].   wg: (D, D) bf16.   bg: (1, D) f32."""
    B, N, D = sim_emb.shape
    if block_b is None:
        block_b = _pick_block_batches(B, N)
    assert B % block_b == 0, "batch must be divisible by the batch block"
    R = block_b * N

    # Block-diagonal additive mask for the dense score matmul (compile-time
    # constant; identical for every grid step).
    rows = np.arange(R)
    same_batch = (rows[:, None] // N) == (rows[None, :] // N)
    mask_bias = np.where(same_batch, 0.0, -1e30).astype(np.float32)   # (R, R)

    return pl.pallas_call(
        graph_reasoning_kernel,
        out_shape=jax.ShapeDtypeStruct((B, N, D), sim_emb.dtype),
        grid_spec=pltpu.PrefetchScalarGridSpec(
            num_scalar_prefetch=0,
            grid=(B // block_b,),
            in_specs=[
                pl.BlockSpec((block_b, N, D), lambda b: (b, 0, 0)),  # sim_emb
                pl.BlockSpec((R, R), lambda b: (0, 0)),              # mask
                pl.BlockSpec((D, 2 * D), lambda b: (0, 0)),          # fused Wqk
                pl.BlockSpec((1, 2 * D), lambda b: (0, 0)),          # fused bqk
                pl.BlockSpec((D, D), lambda b: (0, 0)),              # Wg
                pl.BlockSpec((1, D), lambda b: (0, 0)),              # bg
            ],
            out_specs=pl.BlockSpec((block_b, N, D), lambda b: (b, 0, 0)),
        ),
        compiler_params=pltpu.CompilerParams(
            dimension_semantics=("parallel",)),
    )(sim_emb, mask_bias, w_qk, b_qk, wg, bg)


def init_graph_reasoning_params(key, sim_dim):
    """Mimics the module's init (uniform(-r, r) weights, zero bias).  The Q/K
    weight+bias fusion and the bf16 weight cast happen ONCE here (hoisted out
    of the per-call wrapper)."""
    r = np.sqrt(6.0) / np.sqrt(sim_dim + sim_dim)
    kq, kk, kg = jax.random.split(key, 3)

    def linear(k):
        # nn.Linear stores (out, in); transpose to (in, out) so x @ W works.
        w = jax.random.uniform(k, (sim_dim, sim_dim), jnp.float32, -r, r).T
        return w, jnp.zeros((1, sim_dim), jnp.float32)

    wq, bq = linear(kq)
    wk, bk = linear(kk)
    wg, bg = linear(kg)
    params = dict(wq=wq.astype(jnp.bfloat16), bq=bq,
                  wk=wk.astype(jnp.bfloat16), bk=bk,
                  wg=wg.astype(jnp.bfloat16), bg=bg)
    params["w_qk"] = jnp.concatenate([params["wq"], params["wk"]], axis=1)
    params["b_qk"] = jnp.concatenate([bq, bk], axis=1)
    return params


def reference_module(sim_emb, wq, bq, wk, bk, wg, bg):
    """Literal true-f32 translation of the PyTorch forward."""
    hp = jax.lax.Precision.HIGHEST
    f32 = jnp.float32
    q = jnp.einsum('bnd,de->bne', sim_emb, wq.astype(f32), precision=hp) + bq
    k = jnp.einsum('bnd,de->bne', sim_emb, wk.astype(f32), precision=hp) + bk
    e = jax.nn.softmax(jnp.einsum('bnd,bmd->bnm', q, k, precision=hp), axis=-1)
    sgr = jnp.einsum('bnm,bmd->bnd', e, sim_emb, precision=hp)
    return jax.nn.relu(
        jnp.einsum('bnd,de->bne', sgr, wg.astype(f32), precision=hp) + bg)


def reference_matched(sim_emb, wq, bq, wk, bk, wg, bg, *, matmul_dtype):
    """Same math as reference_module, but with every matmul's operands cast to
    `matmul_dtype` (f32 accumulate) and the softmax denominator applied after
    the aggregation — mirroring the kernel's precision choices.  With
    matmul_dtype=float32 it matches reference_module to f32 rounding."""
    hp = jax.lax.Precision.HIGHEST
    f32 = jnp.float32
    c = lambda a: a.astype(matmul_dtype)
    q = jnp.einsum('bnd,de->bne', c(sim_emb), c(wq),
                   preferred_element_type=f32, precision=hp) + bq
    k = jnp.einsum('bnd,de->bne', c(sim_emb), c(wk),
                   preferred_element_type=f32, precision=hp) + bk
    s = jnp.einsum('bnd,bmd->bnm', c(q), c(k),
                   preferred_element_type=f32, precision=hp)
    p = jnp.exp(s - jnp.max(s, axis=-1, keepdims=True))
    num = jnp.einsum('bnm,bmd->bnd', c(p), c(sim_emb),
                     preferred_element_type=f32, precision=hp)
    sgr = num / jnp.sum(p, axis=-1, keepdims=True)
    out = jnp.einsum('bnd,de->bne', c(sgr), c(wg),
                     preferred_element_type=f32, precision=hp) + bg
    return jax.nn.relu(out)


if __name__ == "__main__":
    # Small shapes consistent with the module: batch=16, L+1=8 graph nodes,
    # sim_dim=128 (lane-dense multiple of 128; real SGRAF uses 256 — works too).
    B, N, D = 16, 8, 128
    key = jax.random.PRNGKey(0)
    k_x, k_p = jax.random.split(key)

    sim_emb = jax.random.normal(k_x, (B, N, D), jnp.float32)
    params = init_graph_reasoning_params(k_p, D)

    fwd = jax.jit(graph_reasoning)
    out = jax.block_until_ready(
        fwd(sim_emb, params["w_qk"], params["b_qk"],
            params["wg"], params["bg"]))

    args = (sim_emb, params["wq"], params["bq"], params["wk"], params["bk"],
            params["wg"], params["bg"])

    # 1) The matched-precision reference really is the module's forward math.
    np.testing.assert_allclose(
        np.asarray(reference_matched(*args, matmul_dtype=jnp.float32)),
        np.asarray(reference_module(*args)), rtol=1e-5, atol=1e-5)

    # 2) The kernel matches that math at its own precision (bf16 MXU operands
    #    + approx reciprocal); a tight f32 comparison is not meaningful for a
    #    bf16-matmul kernel, so the check is against the bf16-matched ref.
    ref_bf16 = reference_matched(*args, matmul_dtype=jnp.bfloat16)
    np.testing.assert_allclose(np.asarray(out), np.asarray(ref_bf16),
                               rtol=2e-2, atol=2e-2)

    print("KERNEL_OK")
</pallas_src>

<mosaic_0001>
module attributes {stable_mosaic.version = 11 : i64} {
  func.func @graph_reasoning_kernel(%arg0: i32, %arg1: memref<8x8x128xf32, #tpu.memory_space<vmem>>, %arg2: memref<64x64xf32, #tpu.memory_space<vmem>>, %arg3: memref<128x256xbf16, #tpu.memory_space<vmem>>, %arg4: memref<1x256xf32, #tpu.memory_space<vmem>>, %arg5: memref<128x128xbf16, #tpu.memory_space<vmem>>, %arg6: memref<1x128xf32, #tpu.memory_space<vmem>>, %arg7: memref<8x8x128xf32, #tpu.memory_space<vmem>>) attributes {dimension_semantics = [#tpu.dimension_semantics<parallel>], iteration_bounds = array<i64: 2>, scalar_prefetch = 0 : i64, scratch_operands = 0 : i64, tpu.core_type = #tpu.core_type<tc>, window_params = [{transform_indices = @transform_0, window_bounds = array<i64: 8, 8, 128>}, {pipeline_mode = #tpu.pipeline_mode<synchronous>, transform_indices = @transform_1, window_bounds = array<i64: 64, 64>}, {pipeline_mode = #tpu.pipeline_mode<synchronous>, transform_indices = @transform_2, window_bounds = array<i64: 128, 256>}, {pipeline_mode = #tpu.pipeline_mode<synchronous>, transform_indices = @transform_3, window_bounds = array<i64: 1, 256>}, {pipeline_mode = #tpu.pipeline_mode<synchronous>, transform_indices = @transform_4, window_bounds = array<i64: 128, 128>}, {pipeline_mode = #tpu.pipeline_mode<synchronous>, transform_indices = @transform_5, window_bounds = array<i64: 1, 128>}, {transform_indices = @transform_6, window_bounds = array<i64: 8, 8, 128>}]} {
    %c0 = arith.constant 0 : index
    %c0_0 = arith.constant 0 : index
    %c0_1 = arith.constant 0 : index
    %0 = vector.load %arg1[%c0, %c0_0, %c0_1] : memref<8x8x128xf32, #tpu.memory_space<vmem>>, vector<8x8x128xf32>
    %1 = vector.shape_cast %0 : vector<8x8x128xf32> to vector<64x128xf32>
    %2 = arith.truncf %1 : vector<64x128xf32> to vector<64x128xbf16>
    %c0_2 = arith.constant 0 : index
    %c0_3 = arith.constant 0 : index
    %3 = vector.load %arg3[%c0_2, %c0_3] : memref<128x256xbf16, #tpu.memory_space<vmem>>, vector<128x256xbf16>
    %cst = arith.constant dense<0.000000e+00> : vector<64x256xf32>
    %4 = tpu.matmul %2, %3, %cst {dimension_numbers = #tpu.dot_dimension_numbers<[1], [0], [0], [1], [0, 0, 1, 1], [], []>} : vector<64x128xbf16>, vector<128x256xbf16>, vector<64x256xf32> -> vector<64x256xf32>
    %c0_4 = arith.constant 0 : index
    %c0_5 = arith.constant 0 : index
    %5 = vector.load %arg4[%c0_4, %c0_5] : memref<1x256xf32, #tpu.memory_space<vmem>>, vector<1x256xf32>
    %6 = vector.broadcast %5 : vector<1x256xf32> to vector<64x256xf32>
    %7 = arith.addf %4, %6 : vector<64x256xf32>
    %8 = vector.extract_strided_slice %7 {offsets = [0, 0], sizes = [64, 128], strides = [1, 1]} : vector<64x256xf32> to vector<64x128xf32>
    %9 = arith.truncf %8 : vector<64x128xf32> to vector<64x128xbf16>
    %10 = vector.extract_strided_slice %7 {offsets = [0, 128], sizes = [64, 128], strides = [1, 1]} : vector<64x256xf32> to vector<64x128xf32>
    %11 = arith.truncf %10 : vector<64x128xf32> to vector<64x128xbf16>
    %cst_6 = arith.constant dense<0.000000e+00> : vector<64x64xf32>
    %12 = tpu.matmul %9, %11, %cst_6 {dimension_numbers = #tpu.dot_dimension_numbers<[1], [1], [0], [0], [0, 0, 1, 0], [], []>} : vector<64x128xbf16>, vector<64x128xbf16>, vector<64x64xf32> -> vector<64x64xf32>
    %c0_7 = arith.constant 0 : index
    %c0_8 = arith.constant 0 : index
    %13 = vector.load %arg2[%c0_7, %c0_8] : memref<64x64xf32, #tpu.memory_space<vmem>>, vector<64x64xf32>
    %14 = arith.addf %12, %13 : vector<64x64xf32>
    %cst_9 = arith.constant dense<0xFF800000> : vector<64xf32>
    %15 = vector.multi_reduction <maximumf>, %14, %cst_9 [1] : vector<64x64xf32> to vector<64xf32>
    %16 = vector.shape_cast %15 : vector<64xf32> to vector<64x1xf32>
    %17 = vector.broadcast %16 : vector<64x1xf32> to vector<64x64xf32>
    %18 = arith.subf %14, %17 : vector<64x64xf32>
    %19 = math.exp %18 : vector<64x64xf32>
    %cst_10 = arith.constant dense<0.000000e+00> : vector<64xf32>
    %20 = vector.multi_reduction <add>, %19, %cst_10 [1] : vector<64x64xf32> to vector<64xf32>
    %21 = vector.shape_cast %20 : vector<64xf32> to vector<64x1xf32>
    %22 = arith.truncf %19 : vector<64x64xf32> to vector<64x64xbf16>
    %cst_11 = arith.constant dense<0.000000e+00> : vector<64x128xf32>
    %23 = tpu.matmul %22, %2, %cst_11 {dimension_numbers = #tpu.dot_dimension_numbers<[1], [0], [0], [1], [0, 0, 1, 1], [], []>} : vector<64x64xbf16>, vector<64x128xbf16>, vector<64x128xf32> -> vector<64x128xf32>
    %24 = tpu.reciprocal %21 {approx = true} : vector<64x1xf32> -> vector<64x1xf32>
    %25 = vector.broadcast %24 : vector<64x1xf32> to vector<64x128xf32>
    %26 = arith.mulf %23, %25 : vector<64x128xf32>
    %27 = arith.truncf %26 : vector<64x128xf32> to vector<64x128xbf16>
    %c0_12 = arith.constant 0 : index
    %c0_13 = arith.constant 0 : index
    %28 = vector.load %arg5[%c0_12, %c0_13] : memref<128x128xbf16, #tpu.memory_space<vmem>>, vector<128x128xbf16>
    %cst_14 = arith.constant dense<0.000000e+00> : vector<64x128xf32>
    %29 = tpu.matmul %27, %28, %cst_14 {dimension_numbers = #tpu.dot_dimension_numbers<[1], [0], [0], [1], [0, 0, 1, 1], [], []>} : vector<64x128xbf16>, vector<128x128xbf16>, vector<64x128xf32> -> vector<64x128xf32>
    %c0_15 = arith.constant 0 : index
    %c0_16 = arith.constant 0 : index
    %30 = vector.load %arg6[%c0_15, %c0_16] : memref<1x128xf32, #tpu.memory_space<vmem>>, vector<1x128xf32>
    %31 = vector.broadcast %30 : vector<1x128xf32> to vector<64x128xf32>
    %32 = arith.addf %29, %31 : vector<64x128xf32>
    %cst_17 = arith.constant 0.000000e+00 : f32
    %33 = vector.broadcast %cst_17 : f32 to vector<64x128xf32>
    %34 = arith.maximumf %32, %33 : vector<64x128xf32>
    %35 = vector.shape_cast %34 : vector<64x128xf32> to vector<8x8x128xf32>
    %c0_18 = arith.constant 0 : index
    %c0_19 = arith.constant 0 : index
    %c0_20 = arith.constant 0 : index
    %36 = vector.load %arg7[%c0_18, %c0_19, %c0_20] : memref<8x8x128xf32, #tpu.memory_space<vmem>>, vector<8x8x128xf32>
    tpu.vector_store %arg7[%c0_18, %c0_19, %c0_20], %35 {strides = array<i32>} : memref<8x8x128xf32, #tpu.memory_space<vmem>>, vector<8x8x128xf32>,
    return
  }
  func.func @transform_0(%arg0: i32) -> (i32, i32, i32) {
    %c0_i32 = arith.constant 0 : i32
    %c0_i32_0 = arith.constant 0 : i32
    %c0_i32_1 = arith.constant 0 : i32
    return %arg0, %c0_i32, %c0_i32_0 : i32, i32, i32
  }
  func.func @transform_1(%arg0: i32) -> (i32, i32) {
    %c0_i32 = arith.constant 0 : i32
    %c0_i32_0 = arith.constant 0 : i32
    %c0_i32_1 = arith.constant 0 : i32
    return %c0_i32, %c0_i32_0 : i32, i32
  }
  func.func @transform_2(%arg0: i32) -> (i32, i32) {
    %c0_i32 = arith.constant 0 : i32
    %c0_i32_0 = arith.constant 0 : i32
    %c0_i32_1 = arith.constant 0 : i32
    return %c0_i32, %c0_i32_0 : i32, i32
  }
  func.func @transform_3(%arg0: i32) -> (i32, i32) {
    %c0_i32 = arith.constant 0 : i32
    %c0_i32_0 = arith.constant 0 : i32
    %c0_i32_1 = arith.constant 0 : i32
    return %c0_i32, %c0_i32_0 : i32, i32
  }
  func.func @transform_4(%arg0: i32) -> (i32, i32) {
    %c0_i32 = arith.constant 0 : i32
    %c0_i32_0 = arith.constant 0 : i32
    %c0_i32_1 = arith.constant 0 : i32
    return %c0_i32, %c0_i32_0 : i32, i32
  }
  func.func @transform_5(%arg0: i32) -> (i32, i32) {
    %c0_i32 = arith.constant 0 : i32
    %c0_i32_0 = arith.constant 0 : i32
    %c0_i32_1 = arith.constant 0 : i32
    return %c0_i32, %c0_i32_0 : i32, i32
  }
  func.func @transform_6(%arg0: i32) -> (i32, i32, i32) {
    %c0_i32 = arith.constant 0 : i32
    %c0_i32_0 = arith.constant 0 : i32
    %c0_i32_1 = arith.constant 0 : i32
    return %arg0, %c0_i32, %c0_i32_0 : i32, i32, i32
  }
}

</mosaic_0001>

<bundles_post_ra>
// kernel: graph_reasoning.1
= control target key start
LH: loop header
LB: loop body
LE: loop exit
PB: predicated region body
PF: predicated region fallthrough
CT: control target
= control target key end

     0   :  { %11 = vsyncpa [#allocation3], 0  ;;  %s1881_s0 = inlined_call_operand.hbm [shape: f32[16,8,128], index: 0, kind: input, shape index: {}]   ;;  %s1882_s1 = inlined_call_operand.hbm [shape: f32[64,64], index: 1, kind: input, shape index: {}]   ;;  %s1883_s2 = inlined_call_operand.hbm [shape: bf16[128,256], index: 2, kind: input, shape index: {}]   ;;  %s1884_s3 = inlined_call_operand.vmem [shape: f32[1,256], index: 3, kind: input, shape index: {}]   ;;  %s1885_s4 = inlined_call_operand.hbm [shape: bf16[128,128], index: 4, kind: input, shape index: {}]   ;;  %s1886_s5 = inlined_call_operand.vmem [shape: f32[1,128], index: 5, kind: input, shape index: {}]   ;;  %s1887_s6 = inlined_call_operand.hbm [shape: f32[16,8,128], index: 6, kind: output, shape index: {}]  }
   0x1   :  { %13 = vsyncpa [#allocation3 + $0x1], 0 }
   0x2   :  { %14 = vsyncpa [#allocation6], 0 }
   0x3   :  { %15 = vsyncpa [#allocation9], 0 }
   0x4   :  { %16 = vsyncpa [#allocation4], 0 }
   0x5   :  { %18 = vsyncpa [#allocation4 + $0x1], 0  ;;  %s1553_s21 = smov 0   ;;  %s1555_s22 = smov 0  }
   0x6   :  { %s1557_s23 = smov 0   ;;  %s1559_s24 = smov 0  }
   0x7 LB: > { %s1574_s25 = sadd.s32 4294967295, %s1504_s24   ;;  %s1033_s26 = sadd.s32 4294967294, %s1504_s24   ;;  %s1504_s24 = sphi %s1559_s24, %s1910_s24   ;;  %s1500_s23 = sphi %s1557_s23, %s1909_s23   ;;  %s1496_s22 = sphi %s1555_s22, %s1908_s22   ;;  %s1492_s21 = sphi %s1553_s21, %s1907_s21  }
   0x8   : > { %p44_p0 = scmp.ne.s32.totalorder %s1496_s22, %s1492_s21  ;;  %p1888_p1 = scmp.eq.s32.totalorder %s1574_s25, 0 }
   0x9   : > { %p179_p3 = scmp.eq.s32.totalorder %s1033_s26, 1  ;;  %p1034_p5 = scmp.ge.s32.totalorder %s1504_s24, 1 }
   0xa   : > { %p1583_p4 = por %p1888_p1, %p44_p0  ;;  %p186_p7 = scmp.lt.s32.totalorder %s1504_s24, 3 }
   0xb   : > { %p1588_p6 = por %p179_p3, %p44_p0  ;;  %s1506_s30 = smov [#allocation5]  }
   0xc   : > { %s1891_s27 = scalar_select %p1583_p4, 1, 0 }
   0xd   : > { %s1892_s28 = scalar_select %p1588_p6, 1, 0 }
   0xe   : > { %p1593_p8 = pnand %p1034_p5, %p186_p7  ;;  %s198_s7 = sshll.u32 %s1506_s30, 4  ;;  %s1597_s7 = int_to_ptr.vmem [resolvable:$true] %s198_s7 }
   0xf   : > { %s1507_s9 = smov [#allocation7]   ;;  %s1508_s11 = smov [#allocation8]  }
  0x10   : > { %s1893_s29 = scalar_select %p1593_p8, 1, 0 }
  0x11   : > { %p1184_p9 = pneg %p1593_p8  ;;  %s211_s10 = sshll.u32 %s1507_s9, 4  ;;  %s1608_s10 = int_to_ptr.vmem [resolvable:$true] %s211_s10 }
  0x12   : > { %s1610_s12 = sshll.u32 %s1508_s11, 4  ;;  %s1316_s15 = scalar_lea.hbm %s1882_s1, 1024  ;;  %s228_s12 = int_to_ptr.vmem [resolvable:$true] %s1610_s12 }
  0x13   : > { %p1604_p11 = pnand %p1184_p9, %p1888_p1  ;;  %p1317_p12 = scmp.ne.s32.totalorder %s1882_s1, %s1316_s15 }
  0x14   : > { %p1323_p5 = scmp.lt.u32.totalorder %s1316_s15, %s1882_s1 }
  0x15   : > { %p1620_p13 = pneg %p1604_p11 }
  0x17   : > { %p1319_p0 = pnand %p1620_p13, %p1317_p12 }
  0x19   : > { %p1320_p3 = pneg %p1319_p0 }
  0x1b   : > { %p1325_p7 = pnand %p1323_p5, %p1320_p3 }
  0x1d   : > { %1328 = shalt.err (!%p1325_p7)
}
  0x1e   : > { %s1329_s26 = scalar_lea.vmem %s1597_s7, 1024  ;;  %p1337_p2 = scmp.lt.s32.totalorder %s1597_s7, %s1597_s7 }
  0x1f   : > { %p1330_p9 = scmp.ne.s32.totalorder %s1597_s7, %s1329_s26  ;;  %p1338_p6 = scmp.lt.s32.totalorder %s1329_s26, %s1329_s26 }
  0x21   : > { %p1332_p10 = pnand %p1330_p9, %p1620_p13  ;;  %p1339_p12 = por %p1338_p6, %p1337_p2 }
  0x23   : > { %p1333_p1 = pneg %p1332_p10 }
  0x25   : > { %p1340_p0 = pnand %p1339_p12, %p1333_p1 }
  0x27   : > { %1343 = shalt.err (!%p1340_p0)
}
  0x28   : > { %s1509_s30 = smov 128   ;;  %s1510_s9 = smov 8  }
  0x29   : > { %1187 = dma.hbm_to_vmem [thread:$0]  (!%p1604_p11), %s1882_s1, 1024, %s1597_s7, [#allocation6], %s1509_s30, %s1509_s30, %s1510_s9  }
  0x2a   : > { %s1344_s16 = scalar_lea.hbm %s1883_s2, 2048 }
  0x2b   : > { %p1345_p1 = scmp.ne.s32.totalorder %s1883_s2, %s1344_s16  ;;  %p1351_p10 = scmp.lt.u32.totalorder %s1344_s16, %s1883_s2 }
  0x2d   : > { %p1347_p2 = pnand %p1345_p1, %p1620_p13 }
  0x2f   : > { %p1348_p6 = pneg %p1347_p2 }
  0x31   : > { %p1353_p3 = pnand %p1351_p10, %p1348_p6 }
  0x33   : > { %1356 = shalt.err (!%p1353_p3)
}
  0x34   : > { %s1357_s7 = scalar_lea.vmem %s1608_s10, 2048  ;;  %p1365_p12 = scmp.lt.s32.totalorder %s1608_s10, %s1608_s10 }
  0x35   : > { %p1358_p5 = scmp.ne.s32.totalorder %s1608_s10, %s1357_s7  ;;  %p1366_p0 = scmp.lt.s32.totalorder %s1357_s7, %s1357_s7 }
  0x37   : > { %p1360_p7 = pnand %p1358_p5, %p1620_p13  ;;  %p1367_p1 = por %p1366_p0, %p1365_p12 }
  0x39   : > { %p1361_p9 = pneg %p1360_p7 }
  0x3b   : > { %p1368_p2 = pnand %p1367_p1, %p1361_p9 }
  0x3d   : > { %1371 = shalt.err (!%p1368_p2)
}
  0x3e   : > { %1190 = dma.hbm_to_vmem [thread:$0]  (!%p1604_p11), %s1883_s2, 2048, %s1608_s10, [#allocation6], %s1509_s30, %s1509_s30, %s1510_s9  }
  0x3f   : > { %s1372_s16 = scalar_lea.hbm %s1885_s4, 1024 }
  0x40   : > { %p1373_p6 = scmp.ne.s32.totalorder %s1885_s4, %s1372_s16  ;;  %p1379_p5 = scmp.lt.u32.totalorder %s1372_s16, %s1885_s4 }
  0x42   : > { %p1375_p10 = pnand %p1373_p6, %p1620_p13 }
  0x44   : > { %p1376_p3 = pneg %p1375_p10 }
  0x46   : > { %p1381_p7 = pnand %p1379_p5, %p1376_p3 }
  0x48   : > { %1384 = shalt.err (!%p1381_p7)
}
  0x49   : > { %s1385_s7 = scalar_lea.vmem %s228_s12, 1024  ;;  %p1393_p1 = scmp.lt.s32.totalorder %s228_s12, %s228_s12 }
  0x4a   : > { %p1386_p9 = scmp.ne.s32.totalorder %s228_s12, %s1385_s7  ;;  %p1394_p2 = scmp.lt.s32.totalorder %s1385_s7, %s1385_s7 }
  0x4c   : > { %p1388_p12 = pnand %p1386_p9, %p1620_p13  ;;  %p1395_p4 = por %p1394_p2, %p1393_p1 }
  0x4e   : > { %p1389_p0 = pneg %p1388_p12 }
  0x50   : > { %p1396_p8 = pnand %p1395_p4, %p1389_p0 }
  0x52   : > { %1399 = shalt.err (!%p1396_p8)
}
  0x53   : > { %s1511_s10 = smov 64   ;;  %s1512_s18 = smov 4  }
  0x54   : > { %1193 = dma.hbm_to_vmem [thread:$0]  (!%p1604_p11), %s1885_s4, 1024, %s228_s12, [#allocation9], %s1511_s10, %s1511_s10, %s1512_s18  }
  0x55   : > { %s1690_s14 = sadd.s32 1, %s1504_s24   ;;  %s31_s16 = sadd.s32 1, %s1500_s23 }
  0x56   : > { %s28_s15 = ssub.s32 %s1504_s24, %s1690_s14  ;;  %p38_p8 = scmp.ne.s32.totalorder %s1500_s23, %s1496_s22 }
  0x57   : > { %p29_p4 = scmp.eq.s32.totalorder %s28_s15, 0  ;;  %p39_p13 = scmp.eq.s32.totalorder %s1504_s24, 0 }
  0x58   : > { %p1205_p6 = scmp.lt.s32.totalorder %s1504_s24, 2  ;;  %p1896_p3 = scmp.eq.s32.totalorder %s1574_s25, 1 }
  0x59   : > { %s1700_s17 = scalar_select %p29_p4, %s1500_s23, %s31_s16  }
  0x5a   : > { %p40_p10 = por %p39_p13, %p38_p8  ;;  %p1704_p5 = por %p1896_p3, %p38_p8 }
  0x5b   : > { %s244_s8 = sand.u32 1, %s1500_s23   ;;  %s1082_s20 = sshll.u32 %s1504_s24, 10 }
  0x5c   : > { %s1039_s12 = sshll.u32 %s244_s8, 6  ;;  %s1713_s10 = scalar_lea.hbm %s1881_s0, %s1082_s20 }
  0x5d   : > { %s248_s18 = scalar_lea.vmem [#allocation2], %s1039_s12  ;;  %p1715_p11 = pnand %p1205_p6, %p40_p10 }
  0x5e   : > { %s255_s11 = sshll.u32 %s248_s18, 4  ;;  %s1721_s15 = scalar_lea.sflag [#allocation3], %s244_s8  ;;  %s1719_s11 = int_to_ptr.vmem [resolvable:$true] %s255_s11 }
  0x5f   : > { %s1400_s16 = scalar_lea.hbm %s1713_s10, 1024  ;;  %p1402_p9 = pneg %p1715_p11 }
  0x60   : > { %p1401_p7 = scmp.ne.s32.totalorder %s1713_s10, %s1400_s16  ;;  %s1405_s26 = scalar_lea.hbm %s1881_s0, 2048 }
  0x61   : > { %p1406_p1 = scmp.lt.u32.totalorder %s1713_s10, %s1881_s0  ;;  %p1407_p2 = scmp.lt.u32.totalorder %s1405_s26, %s1400_s16 }
  0x62   : > { %p1403_p12 = pnand %p1402_p9, %p1401_p7  ;;  %p1409_p8 = scmp.lt.u32.totalorder %s1400_s16, %s1713_s10 }
  0x63   : > { %p1408_p4 = por %p1407_p2, %p1406_p1 }
  0x64   : > { %p1404_p0 = pneg %p1403_p12 }
  0x65   : > { %p1410_p13 = por %p1409_p8, %p1408_p4 }
  0x67   : > { %p1411_p6 = pnand %p1410_p13, %p1404_p0 }
  0x69   : > { %1414 = shalt.err (!%p1411_p6)
}
  0x6a   : > { %s1415_s8 = scalar_lea.vmem %s1719_s11, 1024  ;;  %s1513_s20 = smov [#allocation2]  }
  0x6b   : > { %p1416_p10 = scmp.ne.s32.totalorder %s1719_s11, %s1415_s8  ;;  %s1420_s12 = sshll.u32 %s1513_s20, 4  ;;  %s1421_s12 = int_to_ptr.vmem [resolvable:$false] %s1420_s12 }
  0x6c   : > { %s1422_s7 = scalar_lea.vmem %s1421_s12, 2048  ;;  %p1423_p12 = scmp.lt.s32.totalorder %s1719_s11, %s1421_s12 }
  0x6d   : > { %p1418_p3 = pnand %p1416_p10, %p1402_p9  ;;  %p1424_p1 = scmp.lt.s32.totalorder %s1422_s7, %s1415_s8 }
  0x6f   : > { %p1419_p7 = pneg %p1418_p3  ;;  %p1425_p2 = por %p1424_p1, %p1423_p12 }
  0x71   : > { %p1426_p4 = pnand %p1425_p2, %p1419_p7 }
  0x73   : > { %1429 = shalt.err (!%p1426_p4)
}
  0x74   : > { %1197 = dma.hbm_to_vmem [thread:$0]  (!%p1715_p11), %s1713_s10, 1024, %s1719_s11, %s1721_s15, %s1509_s30, %s1509_s30, %s1510_s9  }
  0x75   : > { %p1899_p9 = scmp.ne.s32.totalorder %s1893_s29, 0 }
  0x76   : > { %s1755_s16 = sand.u32 (!%p1899_p9), 1, %s1496_s22   ;;  %p1900_p0 = scmp.ne.s32.totalorder (!%p1899_p9), %s1891_s27, 0 }
  0x77   : > { %267 = sbr.rel (%p1899_p9) target bundleno = 1261 (0x4ed), region = 44  ;;  %s1043_s26 = sshll.u32 (!%p1899_p9), %s1755_s16, 6 }
  0x78   : > { %s270_s18 = scalar_lea.sflag (!%p1899_p9), [#allocation3], %s1755_s16  ;;  %s1761_s13 = scalar_lea.vmem (!%p1899_p9), [#allocation2], %s1043_s26 }
  0x7e   : > { %1475 = dma.done.wait (%p1900_p0), %s270_s18, 1024  }
  0x7f   : > { %1477 = vsyncadd (%p1900_p0), %s270_s18, 4294966272  ;;  %p1901_p11 = scmp.eq.s32.totalorder %s1574_s25, 0 }
  0x81   : > { %1479 = dma.done.wait (%p1901_p11), [#allocation6], 3072   ;;  %p1902_p8 = pmov %p1901_p11 }
  0x83   : > { %1481 = vsyncadd (%p1902_p8), [#allocation6], 4294964224  ;;  %p1903_p13 = pmov %p1902_p8 }
  0x84   : > { %p1904_p6 = pmov %p1902_p8 }
  0x85   : > { %1483 = dma.done.wait (%p1903_p13), [#allocation9], 1024  }
  0x86   : > { %1485 = vsyncadd (%p1904_p6), [#allocation9], 4294966272  ;;  %v1514_v0 = vmov 0   ;;  %v1252_v1 = vld [vmem:[#allocation7 + $0x4] ss:$8 sps:$4 sm:$0xff]   ;;  %v319_v20 = vld [vmem:[%s1761_s13 + $0x10] sm:$0xff]  ;;  %v347_v29 = vlaneseq }
  0x87   : > { %469 = vmatprep.mubr.bf16.mxu0 %v1514_v0  ;;  %v1254_v2 = vld [vmem:[#allocation7] ss:$8 sps:$4 sm:$0xff]   ;;  %437 = vmatprep.subr.bf16.mxu0 %v1252_v1  ;;  %v1255_v3 = vld [vmem:[#allocation7 + $0x14] ss:$8 sps:$4 sm:$0xff]   ;;  %v1257_v4 = vld [vmem:[#allocation7 + $0x10] ss:$8 sps:$4 sm:$0xff]  }
  0x88   : > { %438 = vmatpush1.bf16.msra.mxu0 %v1254_v2  ;;  %v1258_v5 = vld [vmem:[#allocation7 + $0x24] ss:$8 sps:$4 sm:$0xff]   ;;  %v1260_v6 = vld [vmem:[#allocation7 + $0x20] ss:$8 sps:$4 sm:$0xff]   ;;  %v1261_v7 = vld [vmem:[#allocation7 + $0x34] ss:$8 sps:$4 sm:$0xff]  }
  0x89   : > { %439 = vmatprep.subr.bf16.mxu0 %v1255_v3  ;;  %v1263_v8 = vld [vmem:[#allocation7 + $0x30] ss:$8 sps:$4 sm:$0xff]   ;;  %v1264_v9 = vld [vmem:[#allocation7 + $0x44] ss:$8 sps:$4 sm:$0xff]   ;;  %v1266_v10 = vld [vmem:[#allocation7 + $0x40] ss:$8 sps:$4 sm:$0xff]  }
  0x8a   : > { %v1267_v11 = vld [vmem:[#allocation7 + $0x54] ss:$8 sps:$4 sm:$0xff]   ;;  %v1269_v12 = vld [vmem:[#allocation7 + $0x50] ss:$8 sps:$4 sm:$0xff]   ;;  %v1270_v13 = vld [vmem:[#allocation7 + $0x64] ss:$8 sps:$4 sm:$0xff]  }
  0x8b   : > { %v1272_v14 = vld [vmem:[#allocation7 + $0x60] ss:$8 sps:$4 sm:$0xff]   ;;  %v1273_v15 = vld [vmem:[#allocation7 + $0x74] ss:$8 sps:$4 sm:$0xff]   ;;  %v1275_v16 = vld [vmem:[#allocation7 + $0x70] ss:$8 sps:$4 sm:$0xff]  }
  0x8c   : > { %440 = vmatpush1.bf16.msra.mxu0 %v1257_v4  ;;  %v317_v17 = vld [vmem:[%s1761_s13] sm:$0xff]  ;;  %v318_v18 = vld [vmem:[%s1761_s13 + $0x8] sm:$0xff]  ;;  %v320_v21 = vld [vmem:[%s1761_s13 + $0x18] sm:$0xff]  ;;  %v348_v30 = vshrl.u32 %v347_v29, 7  ;;  %vm591_vm0 = vcmask 523264   ;;  %s313_s10 = scalar_lea.vmem [#allocation10], %s1043_s26 }
  0x8d   : > { %441 = vmatprep.subr.bf16.mxu0 %v1258_v5  ;;  %v1777_v19 = vpack.c.bf16 %v318_v18, %v317_v17  ;;  %v1782_v22 = vpack.c.bf16 %v320_v21, %v319_v20  ;;  %v321_v23 = vld [vmem:[%s1761_s13 + $0x20] sm:$0xff]  ;;  %v322_v24 = vld [vmem:[%s1761_s13 + $0x28] sm:$0xff]  ;;  %v323_v26 = vld [vmem:[%s1761_s13 + $0x30] sm:$0xff]  ;;  %s931_s11 = sshll.u32 %s313_s10, 4  ;;  %s1083_s15 = sshll.u32 %s1574_s25, 10  ;;  %s1832_s11 = int_to_ptr.vmem [resolvable:$true] %s931_s11 }
  0x8e   : > { %v1787_v25 = vpack.c.bf16 %v322_v24, %v321_v23  ;;  %v324_v27 = vld [vmem:[%s1761_s13 + $0x38] sm:$0xff]  ;;  %v349_v31 = vsub.s32 0, %v348_v30  ;;  %v345_v32 = vld [vmem:[%s1884_s3] sm:$0x3]  ;;  %v353_v33 = vsub.s32 1, %v348_v30  ;;  %v519_v18 = vld [vmem:[#allocation5 + $0x8] sm:$0xff]  ;;  %s1837_s12 = scalar_lea.hbm %s1887_s6, %s1083_s15 }
  0x8f   : > { %v1792_v28 = vpack.c.bf16 %v324_v27, %v323_v26  ;;  %v522_v27 = vld [vmem:[#allocation5 + $0x20] sm:$0xff]  ;;  %v524_v30 = vld [vmem:[#allocation5 + $0x30] sm:$0xff]  ;;  %s918_s25 = scalar_lea.sflag [#allocation4], %s1755_s16  ;;  %s1430_s7 = scalar_lea.vmem %s1832_s11, 1024 }
  0x90   : > { %442 = vmatpush1.bf16.msra.mxu0 %v1260_v6  ;;  %v350_v34 = vrot.slane %v345_v32, %v349_v31  ;;  %v354_v36 = vrot.slane %v345_v32, %v353_v33  ;;  %v523_v32 = vld [vmem:[#allocation5 + $0x28] sm:$0xff]  ;;  %p1431_p10 = scmp.ne.s32.totalorder %s1832_s11, %s1430_s7  ;;  %s1515_s26 = smov [#allocation10]  }
  0x91   : > { %443 = vmatprep.subr.bf16.mxu0 %v1261_v7  ;;  %s1434_s18 = sshll.u32 %s1515_s26, 4  ;;  %s1435_s18 = int_to_ptr.vmem [resolvable:$false] %s1434_s18 }
  0x92   : > { %p1432_p3 = pnand %p1431_p10, %p1704_p5  ;;  %s1436_s13 = scalar_lea.vmem %s1435_s18, 2048 }
  0x93   : > { %p1437_p12 = scmp.lt.s32.totalorder %s1832_s11, %s1435_s18  ;;  %p1438_p1 = scmp.lt.s32.totalorder %s1436_s13, %s1430_s7 }
  0x94   : > { %444 = vmatpush1.bf16.msra.mxu0 %v1263_v8  ;;  %p1433_p7 = pneg %p1432_p3 }
  0x95   : > { %445 = vmatprep.subr.bf16.mxu0 %v1264_v9  ;;  %p1439_p2 = por %p1438_p1, %p1437_p12 }
  0x97   : > { %p1440_p4 = pnand %p1439_p2, %p1433_p7 }
  0x98   : > { %446 = vmatpush1.bf16.msra.mxu0 %v1266_v10 }
  0x99   : > { %447 = vmatprep.subr.bf16.mxu0 %v1267_v11 }
  0x9c   : > { %448 = vmatpush1.bf16.msra.mxu0 %v1269_v12  ;;  %v520_v12 = vld [vmem:[#allocation5 + $0x10] sm:$0xff] }
  0x9d   : > { %449 = vmatprep.subr.bf16.mxu0 %v1270_v13  ;;  %v518_v13 = vld [vmem:[#allocation5] sm:$0xff] }
  0xa0   : > { %450 = vmatpush1.bf16.msra.mxu0 %v1272_v14 }
  0xa1   : > { %451 = vmatprep.subr.bf16.mxu0 %v1273_v15  ;;  %v521_v15 = vld [vmem:[#allocation5 + $0x18] sm:$0xff] }
  0xa4   : > { %452 = vmatpush1.bf16.msra.mxu0 %v1275_v16 }
  0xa7   : > { %470 = vmatmul.mubr.bf16.vlgmr.msra.gmra.mrb[0].mxu0 %v1777_v19 }
  0xa8   : > { %479 = vmatprep.mubr.bf16.mxu0 %v1514_v0 }
  0xaf   : > { %480 = vmatmul.mubr.bf16.gmra.mrb[4].mxu0 %v1782_v22 }
  0xb0   : > { %489 = vmatprep.mubr.bf16.mxu0 %v1514_v0 }
  0xb7   : > { %490 = vmatmul.mubr.bf16.gmra.mrb[8].mxu0 %v1787_v25 }
  0xb8   : > { %499 = vmatprep.mubr.bf16.mxu0 %v1514_v0 }
  0xbf   : > { %500 = vmatmul.mubr.bf16.gmra.mrb[12].mxu0 %v1792_v28 }
 0x17a   : > { %v471_v35 = vpop.f32.mrb[0].mxu0 }
 0x17b   : > { %v473_v37 = vpop.f32.mrb[1].mxu0  ;;  %v472_v39 = vadd.f32 %v471_v35, %v350_v34  ;;  %v525_v35 = vld [vmem:[#allocation5 + $0x38] sm:$0xff] }
 0x17c   : > { %v475_v38 = vpop.f32.mrb[2].mxu0  ;;  %v474_v42 = vadd.f32 %v473_v37, %v354_v36 }
 0x17d   : > { %v476_v40 = vadd.f32 %v475_v38, %v350_v34  ;;  %v477_v41 = vpop.f32.mrb[3].mxu0 }
 0x17e   : > { %v478_v43 = vadd.f32 %v477_v41, %v354_v36 }
 0x17f   : > { %v510_v44 = vpack.c.bf16 %v476_v40, %v472_v39 }
 0x180   : > { %v514_v45 = vpack.c.bf16 %v478_v43, %v474_v42 }
 0x181   : > { %1120 = vmatprep.mubr.bf16.mxu1 %v510_v44 }
 0x182   : > { %v481_v46 = vpop.f32.mrb[4].mxu0  ;;  %1112 = vmatprep.subr.bf16.mxu1 %v514_v45 }
 0x183   : > { %v483_v47 = vpop.f32.mrb[5].mxu0  ;;  %1113 = vmatpush3.bf16.xpose.msra.mxu1 %v514_v45  ;;  %v482_v49 = vadd.f32 %v481_v46, %v350_v34 }
 0x184   : > { %v485_v48 = vpop.f32.mrb[6].mxu0  ;;  %v484_v52 = vadd.f32 %v483_v47, %v354_v36 }
 0x185   : > { %v486_v50 = vadd.f32 %v485_v48, %v350_v34  ;;  %v487_v51 = vpop.f32.mrb[7].mxu0 }
 0x186   : > { %v488_v53 = vadd.f32 %v487_v51, %v354_v36 }
 0x187   : > { %v511_v54 = vpack.c.bf16 %v486_v50, %v482_v49 }
 0x188   : > { %v515_v55 = vpack.c.bf16 %v488_v53, %v484_v52 }
 0x18a   : > { %v491_v56 = vpop.f32.mrb[8].mxu0  ;;  %1114 = vmatprep.subr.bf16.mxu1 %v515_v55 }
 0x18b   : > { %v493_v57 = vpop.f32.mrb[9].mxu0  ;;  %1115 = vmatpush3.bf16.xpose.msra.mxu1 %v515_v55  ;;  %v492_v59 = vadd.f32 %v491_v56, %v350_v34 }
 0x18c   : > { %v495_v58 = vpop.f32.mrb[10].mxu0  ;;  %v494_v62 = vadd.f32 %v493_v57, %v354_v36 }
 0x18d   : > { %v496_v60 = vadd.f32 %v495_v58, %v350_v34  ;;  %v497_v61 = vpop.f32.mrb[11].mxu0 }
 0x18e   : > { %v498_v63 = vadd.f32 %v497_v61, %v354_v36 }
 0x18f   : > { %v512_v0 = vpack.c.bf16 %v496_v60, %v492_v59 }
 0x190   : > { %v516_v1 = vpack.c.bf16 %v498_v63, %v494_v62 }
 0x192   : > { %v501_v2 = vpop.f32.mrb[12].mxu0  ;;  %1116 = vmatprep.subr.bf16.mxu1 %v516_v1 }
 0x193   : > { %v503_v3 = vpop.f32.mrb[13].mxu0  ;;  %1117 = vmatpush3.bf16.xpose.msra.mxu1 %v516_v1  ;;  %v502_v5 = vadd.f32 %v501_v2, %v350_v34 }
 0x194   : > { %v505_v4 = vpop.f32.mrb[14].mxu0  ;;  %v504_v8 = vadd.f32 %v503_v3, %v354_v36 }
 0x195   : > { %v506_v6 = vadd.f32 %v505_v4, %v350_v34  ;;  %v507_v7 = vpop.f32.mrb[15].mxu0 }
 0x196   : > { %v508_v9 = vadd.f32 %v507_v7, %v354_v36 }
 0x197   : > { %v513_v10 = vpack.c.bf16 %v506_v6, %v502_v5 }
 0x198   : > { %v517_v11 = vpack.c.bf16 %v508_v9, %v504_v8 }
 0x19a   : > { %1118 = vmatprep.subr.bf16.mxu1 %v517_v11 }
 0x19b   : > { %1119 = vmatpush3.bf16.xpose.msra.mxu1 %v517_v11 }
 0x19c   : > { %1128 = vmatprep.subr.bf16.mxu1 %v1777_v19 }
 0x1a2   : > { %1121 = vmatmul.mubr.bf16.vlgmr.msra.gmra.mrb[0].mxu1 %v511_v54 }
 0x1a3   : > { %1124 = vmatprep.mubr.bf16.mxu1 %v512_v0  ;;  %1129 = vmatpush3.bf16.msra.mxu1 %v1777_v19 }
 0x1a4   : > { %1130 = vmatprep.subr.bf16.mxu1 %v1782_v22 }
 0x1a7   : > { %1131 = vmatpush3.bf16.msra.mxu1 %v1782_v22 }
 0x1a8   : > { %1132 = vmatprep.subr.bf16.mxu1 %v1787_v25 }
 0x1aa   : > { %1125 = vmatmul.mubr.bf16.gmra.mrb[4].mxu1 %v513_v10 }
 0x1ab   : > { %1133 = vmatpush3.bf16.msra.mxu1 %v1787_v25 }
 0x1ac   : > { %1134 = vmatprep.subr.bf16.mxu1 %v1792_v28 }
 0x1af   : > { %1135 = vmatpush3.bf16.msra.mxu1 %v1792_v28 }
 0x275   : > { %v1122_v14 = vpop.f32.mrb[0].mxu1 }
 0x276   : > { %v569_v16 = vadd.f32 %v1122_v14, %v520_v12  ;;  %v560_v17 = vpop.f32.mrb[1].mxu1 }
 0x277   : > { %v561_v19 = vadd.f32 %v560_v17, %v518_v13  ;;  %v1123_v20 = vpop.f32.mrb[2].mxu1 }
 0x278   : > { %v572_v21 = vadd.f32 %v1123_v20, %v521_v15  ;;  %v563_v22 = vpop.f32.mrb[3].mxu1  ;;  %v598_v23 = vsel %vm591_vm0, %v569_v16, -inf }
 0x279   : > { %v564_v24 = vadd.f32 %v563_v22, %v519_v18  ;;  %599 = vmax.xlane.f32.xlu1 %v598_v23  ;;  %v592_v25 = vsel %vm591_vm0, %v561_v19, -inf }
 0x27a   : > { %593 = vmax.xlane.f32.xlu0 %v592_v25  ;;  %v601_v26 = vsel %vm591_vm0, %v572_v21, -inf  ;;  %v1277_v25 = vld [vmem:[#allocation8 + $0x8] sm:$0xff]  }
 0x27b   : > { %v595_v29 = vsel %vm591_vm0, %v564_v24, -inf }
 0x27d   : > { %602 = vmax.xlane.f32.xlu1 %v601_v26  ;;  %v1126_v28 = vpop.f32.mrb[4].mxu1  ;;  %v1278_v26 = vld [vmem:[#allocation8 + $0x10] sm:$0xff]  }
 0x27e   : > { %v576_v31 = vpop.f32.mrb[5].mxu1  ;;  %596 = vmax.xlane.f32.xlu0 %v595_v29  ;;  %v585_v37 = vadd.f32 %v1126_v28, %v524_v30  ;;  %v1280_v28 = vld [vmem:[#allocation8 + $0x20] sm:$0xff]   ;;  %v1281_v29 = vld [vmem:[#allocation8 + $0x28] sm:$0xff]   ;;  %v1282_v30 = vld [vmem:[#allocation8 + $0x30] sm:$0xff]  }
 0x27f   : > { %v577_v33 = vadd.f32 %v576_v31, %v522_v27  ;;  %v1127_v34 = vpop.f32.mrb[6].mxu1  ;;  %v1279_v27 = vld [vmem:[#allocation8 + $0x18] sm:$0xff]  }
 0x280   : > { %v579_v36 = vpop.f32.mrb[7].mxu1  ;;  %v588_v40 = vadd.f32 %v1127_v34, %v525_v35  ;;  %v610_v42 = vsel %vm591_vm0, %v585_v37, -inf  ;;  %v1283_v31 = vld [vmem:[#allocation8 + $0x38] sm:$0xff]  }
 0x281   : > { %v580_v38 = vadd.f32 %v579_v36, %v523_v32  ;;  %v604_v39 = vsel %vm591_vm0, %v577_v33, -inf }
 0x282   : > { %605 = vmax.xlane.f32.xlu0 %v604_v39  ;;  %v613_v43 = vsel %vm591_vm0, %v588_v40, -inf }
 0x283   : > { %v607_v41 = vsel %vm591_vm0, %v580_v38, -inf }
 0x284   : > { %608 = vmax.xlane.f32.xlu1 %v607_v41 }
 0x286   : > { %611 = vmax.xlane.f32.xlu0 %v610_v42 }
 0x288   : > { %614 = vmax.xlane.f32.xlu1 %v613_v43 }
 0x306   : > { %v600_v44 = vpop.xlane.xlu1 %599 }
 0x307   : > { %v618_v45 = vsub.f32 %v569_v16, %v600_v44  ;;  %v594_v46 = vpop.xlane.xlu0 %593 }
 0x308   : > { %v616_v47 = vsub.f32 %v561_v19, %v594_v46 }
 0x309   : > { %v628_v48 = vmul.f32 1.442695, %v618_v45 }
 0x30a   : > { %v624_v49 = vmul.f32 1.442695, %v616_v47  ;;  %v603_v50 = vpop.xlane.xlu1 %602 }
 0x30b   : > { %v619_v51 = vsub.f32 %v572_v21, %v603_v50  ;;  %v597_v52 = vpop.xlane.xlu0 %596 }
 0x30c   : > { %1284 = vpow2.f32 %v624_v49  ;;  %v617_v53 = vsub.f32 %v564_v24, %v597_v52  ;;  %v1276_v24 = vld [vmem:[#allocation8] sm:$0xff]  }
 0x30d   : > { %v630_v54 = vmul.f32 1.442695, %v619_v51  ;;  %1286 = vpow2.f32 %v628_v48  ;;  %1144 = vmatprep.subr.bf16.mxu0 %v1276_v24 }
 0x30e   : > { %v626_v55 = vmul.f32 1.442695, %v617_v53  ;;  %1145 = vmatpush3.bf16.msra.mxu0 %v1276_v24 }
 0x30f   : > { %1288 = vpow2.f32 %v630_v54  ;;  %v606_v56 = vpop.xlane.xlu0 %605  ;;  %1146 = vmatprep.subr.bf16.mxu0 %v1277_v25 }
 0x310   : > { %1290 = vpow2.f32 %v626_v55  ;;  %v620_v57 = vsub.f32 %v577_v33, %v606_v56 }
 0x311   : > { %v609_v58 = vpop.xlane.xlu1 %608 }
 0x312   : > { %v632_v59 = vmul.f32 1.442695, %v620_v57  ;;  %v621_v60 = vsub.f32 %v580_v38, %v609_v58  ;;  %1147 = vmatpush3.bf16.msra.mxu0 %v1277_v25 }
 0x313   : > { %v612_v61 = vpop.xlane.xlu0 %611  ;;  %1148 = vmatprep.subr.bf16.mxu0 %v1278_v26 }
 0x314   : > { %1292 = vpow2.f32 %v632_v59  ;;  %v634_v62 = vmul.f32 1.442695, %v621_v60  ;;  %v622_v63 = vsub.f32 %v585_v37, %v612_v61 }
 0x315   : > { %v615_v0 = vpop.xlane.xlu1 %614 }
 0x316   : > { %v1285_v1 = vpop.eup %1284  ;;  %1294 = vpow2.f32 %v634_v62  ;;  %v636_v2 = vmul.f32 1.442695, %v622_v63  ;;  %v623_v3 = vsub.f32 %v588_v40, %v615_v0  ;;  %1149 = vmatpush3.bf16.msra.mxu0 %v1278_v26 }
 0x317   : > { %v640_v4 = vsel %vm591_vm0, %v1285_v1, 0.0  ;;  %v1287_v5 = vpop.eup %1286  ;;  %1150 = vmatprep.subr.bf16.mxu0 %v1279_v27 }
 0x318   : > { %1296 = vpow2.f32 %v636_v2  ;;  %v638_v6 = vmul.f32 1.442695, %v623_v3  ;;  %641 = vadd.xlane.f32.xlu0 %v640_v4  ;;  %v646_v9 = vsel %vm591_vm0, %v1287_v5, 0.0  ;;  %v1068_v4 = vld [vmem:[%s1886_s5] ss:$0 sm:$0xff] }
 0x319   : > { %v1289_v7 = vpop.eup %1288 }
 0x31a   : > { %v1291_v8 = vpop.eup %1290  ;;  %1298 = vpow2.f32 %v638_v6  ;;  %v665_v12 = vpack.c.bf16 %v1289_v7, %v1287_v5  ;;  %v649_v14 = vsel %vm591_vm0, %v1289_v7, 0.0  ;;  %1151 = vmatpush3.bf16.msra.mxu0 %v1279_v27 }
 0x31b   : > { %v643_v10 = vsel %vm591_vm0, %v1291_v8, 0.0  ;;  %v664_v11 = vpack.c.bf16 %v1291_v8, %v1285_v1  ;;  %1152 = vmatprep.subr.bf16.mxu0 %v1280_v28 }
 0x31c   : > { %647 = vadd.xlane.f32.xlu0 %v646_v9  ;;  %644 = vadd.xlane.f32.xlu1 %v643_v10 }
 0x31d   : > { %1136 = vmatprep.mubr.msk.bf16.mxu1 %vm591_vm0, %v664_v11 }
 0x31e   : > { %v1293_v13 = vpop.eup %1292  ;;  %1137 = vmatmul.mubr.msk.bf16.vlgmr.msra.gmra.mrb[8].mxu1 %vm591_vm0, %v665_v12  ;;  %1153 = vmatpush3.bf16.msra.mxu0 %v1280_v28 }
 0x31f   : > { %v652_v15 = vsel %vm591_vm0, %v1293_v13, 0.0  ;;  %1154 = vmatprep.subr.bf16.mxu0 %v1281_v29 }
 0x320   : > { %v1295_v16 = vpop.eup %1294  ;;  %650 = vadd.xlane.f32.xlu1 %v649_v14  ;;  %653 = vadd.xlane.f32.xlu0 %v652_v15 }
 0x321   : > { %v666_v17 = vpack.c.bf16 %v1295_v16, %v1293_v13  ;;  %v655_v19 = vsel %vm591_vm0, %v1295_v16, 0.0 }
 0x322   : > { %v1297_v18 = vpop.eup %1296  ;;  %1155 = vmatpush3.bf16.msra.mxu0 %v1281_v29 }
 0x323   : > { %1140 = vmatprep.mubr.msk.bf16.mxu1 %vm591_vm0, %v666_v17  ;;  %v658_v20 = vsel %vm591_vm0, %v1297_v18, 0.0  ;;  %1156 = vmatprep.subr.bf16.mxu0 %v1282_v30 }
 0x324   : > { %v1299_v21 = vpop.eup %1298  ;;  %656 = vadd.xlane.f32.xlu1 %v655_v19  ;;  %659 = vadd.xlane.f32.xlu0 %v658_v20 }
 0x325   : > { %v667_v22 = vpack.c.bf16 %v1299_v21, %v1297_v18  ;;  %v661_v23 = vsel %vm591_vm0, %v1299_v21, 0.0 }
 0x326   : > { %1157 = vmatpush3.bf16.msra.mxu0 %v1282_v30 }
 0x327   : > { %1141 = vmatmul.mubr.msk.bf16.gmra.mrb[12].mxu1 %vm591_vm0, %v667_v22  ;;  %1158 = vmatprep.subr.bf16.mxu0 %v1283_v31 }
 0x328   : > { %662 = vadd.xlane.f32.xlu1 %v661_v23 }
 0x32a   : > { %1159 = vmatpush3.bf16.msra.mxu0 %v1283_v31 }
 0x3a5   : > { %v642_v32 = vpop.xlane.xlu0 %641 }
 0x3a6   : > { %1300 = vrcp.f32 %v642_v32 }
 0x3a9   : > { %v645_v33 = vpop.xlane.xlu1 %644  ;;  %v648_v34 = vpop.xlane.xlu0 %647 }
 0x3aa   : > { %1302 = vrcp.f32 %v648_v34 }
 0x3ad   : > { %v651_v35 = vpop.xlane.xlu1 %650  ;;  %v654_v36 = vpop.xlane.xlu0 %653 }
 0x3ae   : > { %1304 = vrcp.f32 %v651_v35 }
 0x3af   : > { %1306 = vrcp.f32 %v645_v33 }
 0x3b0   : > { %1308 = vrcp.f32 %v654_v36  ;;  %v1301_v40 = vpop.eup %1300 }
 0x3b1   : > { %v657_v37 = vpop.xlane.xlu1 %656  ;;  %v660_v38 = vpop.xlane.xlu0 %659 }
 0x3b2   : > { %1310 = vrcp.f32 %v660_v38 }
 0x3b4   : > { %v1303_v42 = vpop.eup %1302 }
 0x3b5   : > { %v663_v39 = vpop.xlane.xlu1 %662 }
 0x3b6   : > { %1312 = vrcp.f32 %v663_v39 }
 0x3b7   : > { %1314 = vrcp.f32 %v657_v37 }
 0x3b8   : > { %v1305_v44 = vpop.eup %1304 }
 0x3b9   : > { %v1307_v46 = vpop.eup %1306 }
 0x3ba   : > { %v1309_v54 = vpop.eup %1308 }
 0x3bc   : > { %v1311_v56 = vpop.eup %1310 }
 0x3c0   : > { %v1313_v58 = vpop.eup %1312 }
 0x3c1   : > { %v1315_v60 = vpop.eup %1314 }
 0x3f1   : > { %v1138_v41 = vpop.f32.mrb[8].mxu1 }
 0x3f2   : > { %v714_v43 = vpop.f32.mrb[9].mxu1  ;;  %v755_v47 = vmul.f32 %v1303_v42, %v1138_v41 }
 0x3f3   : > { %v1139_v45 = vpop.f32.mrb[10].mxu1  ;;  %v753_v50 = vmul.f32 %v1301_v40, %v714_v43 }
 0x3f4   : > { %v756_v48 = vmul.f32 %v1305_v44, %v1139_v45  ;;  %v717_v49 = vpop.f32.mrb[11].mxu1 }
 0x3f5   : > { %v754_v51 = vmul.f32 %v1307_v46, %v717_v49 }
 0x3f6   : > { %v762_v52 = vpack.c.bf16 %v756_v48, %v755_v47 }
 0x3f7   : > { %v761_v53 = vpack.c.bf16 %v754_v51, %v753_v50 }
 0x3f9   : > { %1160 = vmatprep.mubr.bf16.mxu0 %v761_v53 }
 0x3fa   : > { %v1142_v55 = vpop.f32.mrb[12].mxu1  ;;  %1161 = vmatmul.mubr.bf16.vlgmr.msra.gmra.mrb[16].mxu0 %v762_v52 }
 0x3fb   : > { %v730_v57 = vpop.f32.mrb[13].mxu1  ;;  %v759_v61 = vmul.f32 %v1311_v56, %v1142_v55 }
 0x3fc   : > { %v1143_v59 = vpop.f32.mrb[14].mxu1  ;;  %v757_v0 = vmul.f32 %v1309_v54, %v730_v57 }
 0x3fd   : > { %v760_v62 = vmul.f32 %v1313_v58, %v1143_v59  ;;  %v733_v63 = vpop.f32.mrb[15].mxu1 }
 0x3fe   : > { %v758_v1 = vmul.f32 %v1315_v60, %v733_v63 }
 0x3ff   : > { %v764_v2 = vpack.c.bf16 %v760_v62, %v759_v61 }
 0x400   : > { %v763_v3 = vpack.c.bf16 %v758_v1, %v757_v0 }
 0x402   : > { %1164 = vmatprep.mubr.bf16.mxu0 %v763_v3 }
 0x403   : > { %1165 = vmatmul.mubr.bf16.gmra.mrb[20].mxu0 %v764_v2 }
 0x4cd   : > { %v1162_v5 = vpop.f32.mrb[16].mxu0 }
 0x4ce   : > { %v879_v6 = vadd.f32 %v1162_v5, %v1068_v4  ;;  %v870_v7 = vpop.f32.mrb[17].mxu0 }
 0x4cf   : > { %v871_v8 = vadd.f32 %v1068_v4, %v870_v7  ;;  %v1163_v9 = vpop.f32.mrb[18].mxu0 }
 0x4d0   : > { %v903_v10 = vmax.f32 %v879_v6, 0.0  ;;  %v882_v11 = vadd.f32 %v1163_v9, %v1068_v4  ;;  %v873_v12 = vpop.f32.mrb[19].mxu0 }
 0x4d1   : > { %v901_v13 = vmax.f32 %v871_v8, 0.0  ;;  %v874_v14 = vadd.f32 %v1068_v4, %v873_v12 }
 0x4d2   : > { %911 = vst [vmem:[%s313_s10 + $0x10] sm:$0xff] %v903_v10  ;;  %v904_v15 = vmax.f32 %v882_v11, 0.0 }
 0x4d3   : > { %909 = vst [vmem:[%s313_s10] sm:$0xff] %v901_v13  ;;  %v902_v16 = vmax.f32 %v874_v14, 0.0 }
 0x4d4   : > { %912 = vst [vmem:[%s313_s10 + $0x18] sm:$0xff] %v904_v15 }
 0x4d5   : > { %910 = vst [vmem:[%s313_s10 + $0x8] sm:$0xff] %v902_v16 }
 0x4d6   : > { %v1166_v17 = vpop.f32.mrb[20].mxu0 }
 0x4d7   : > { %v895_v18 = vadd.f32 %v1166_v17, %v1068_v4  ;;  %v886_v19 = vpop.f32.mrb[21].mxu0 }
 0x4d8   : > { %v887_v20 = vadd.f32 %v1068_v4, %v886_v19  ;;  %v1167_v21 = vpop.f32.mrb[22].mxu0 }
 0x4d9   : > { %v907_v22 = vmax.f32 %v895_v18, 0.0  ;;  %v898_v23 = vadd.f32 %v1167_v21, %v1068_v4  ;;  %v889_v24 = vpop.f32.mrb[23].mxu0 }
 0x4da   : > { %v905_v25 = vmax.f32 %v887_v20, 0.0  ;;  %v890_v26 = vadd.f32 %v1068_v4, %v889_v24 }
 0x4db   : > { %915 = vst [vmem:[%s313_s10 + $0x30] sm:$0xff] %v907_v22  ;;  %v908_v27 = vmax.f32 %v898_v23, 0.0 }
 0x4dc   : > { %913 = vst [vmem:[%s313_s10 + $0x20] sm:$0xff] %v905_v25  ;;  %v906_v28 = vmax.f32 %v890_v26, 0.0 }
 0x4dd   : > { %916 = vst [vmem:[%s313_s10 + $0x38] sm:$0xff] %v908_v27 }
 0x4de   : > { %914 = vst [vmem:[%s313_s10 + $0x28] sm:$0xff] %v906_v28 }
 0x4df   : > { %1443 = shalt.err (!%p1440_p4)
}
 0x4e0   : > { %s1444_s27 = scalar_lea.hbm %s1837_s12, 1024  ;;  %s1448_s9 = scalar_lea.hbm %s1887_s6, 2048 }
 0x4e1   : > { %p1445_p9 = scmp.ne.s32.totalorder %s1837_s12, %s1444_s27  ;;  %p1449_p8 = scmp.lt.u32.totalorder %s1837_s12, %s1887_s6 }
 0x4e2   : > { %p1450_p13 = scmp.lt.u32.totalorder %s1448_s9, %s1444_s27  ;;  %p1452_p10 = scmp.lt.u32.totalorder %s1444_s27, %s1837_s12 }
 0x4e3   : > { %p1446_p0 = pnand %p1445_p9, %p1704_p5 }
 0x4e4   : > { %p1451_p6 = por %p1450_p13, %p1449_p8 }
 0x4e5   : > { %p1447_p11 = pneg %p1446_p0 }
 0x4e6   : > { %p1453_p3 = por %p1452_p10, %p1451_p6 }
 0x4e8   : > { %p1454_p7 = pnand %p1453_p3, %p1447_p11 }
 0x4ea   : > { %1457 = shalt.err (!%p1454_p7)
}
 0x4eb   : > { %s1516_s8 = smov 128   ;;  %s1517_s20 = smov 8  }
 0x4ec   : > { %1182 = dma.vmem_to_hbm [thread:$0]  (%p1704_p5), %s1832_s11, 1024, %s1837_s12, %s918_s25, %s1516_s8, %s1516_s8, %s1517_s20  }
 0x4ed PF: > { %s946_s7 = sand.u32 1, %s1492_s21   ;;  %p1905_p12 = scmp.ne.s32.totalorder %s1892_s28, 0 }
 0x4ee   : > { %p1906_p1 = scmp.ge.s32.totalorder %s1504_s24, 2  ;;  %s947_s26 = scalar_lea.sflag [#allocation4], %s946_s7 }
 0x4f0   : > { %p1199_p2 = pnand %p1906_p1, %p1905_p12 }
 0x4f2   : > { %1487 = dma.done.wait (!%p1199_p2), %s947_s26, 1024  }
 0x4f3   : > { %1489 = vsyncadd (!%p1199_p2), %s947_s26, 4294966272  ;;  %p21_p4 = scmp.ge.s32.totalorder %s1690_s14, 4   ;;  %s1907_s21 = smov %s1496_s22 }
 0x4f4   : > { %s1908_s22 = smov %s1500_s23  ;;  %s1909_s23 = smov %s1700_s17 }
 0x4f5   : > { %s1910_s24 = smov %s1690_s14  ;;  %23 = sbr.rel (!%p21_p4) target bundleno = 7 (0x7), region = 101 }
 0x4fc   :  { %952 = vsyncpa [#allocation3], 1 }
 0x4fd   :  { %954 = vsyncpa [#allocation3 + $0x1], 1 }
 0x4fe   :  { %955 = vsyncpa [#allocation6], 1 }
 0x4ff   :  { %956 = vsyncpa [#allocation9], 1 }
 0x500   :  { %957 = vsyncpa [#allocation4], 1 }
 0x501   :  { %959 = vsyncpa [#allocation4 + $0x1], 1 }

</bundles_post_ra>
